<compile_context>
chip_gen: v6e
topology: v6e:2x2x1
jax: 0.10.0
libtpu: 0.0.40
codegen_flags: <defaults>
</compile_context>

<pallas_src>
import functools

import jax
import jax.numpy as jnp
from jax.experimental import pallas as pl
from jax.experimental.pallas import tpu as pltpu

H1 = 32  # layer1 width  (fixed by the PyTorch module)
H2 = 8   # layer2 width  (fixed by the PyTorch module)


def _round_up(n, m):
    return ((n + m - 1) // m) * m


def big_network_kernel(x_ref, p_ref, out_ref, *,
                       in_size, out_size, r1, r2, r3):
    """One batch tile: out = relu(relu(x@W1+b1)@W2+b2)@W3+b3."""
    x = x_ref[...]

    # Static slices into the single packed parameter buffer (no data movement).
    w1 = p_ref[0:in_size, 0:H1]
    w2 = p_ref[r1:r1 + H1, 0:H2]
    w3 = p_ref[r2:r2 + H2, 0:out_size]
    b1 = p_ref[r3:r3 + 1, 0:H1]
    b2 = p_ref[r3 + 1:r3 + 2, 0:H2]
    b3 = p_ref[r3 + 2:r3 + 3, 0:out_size]

    l1 = jnp.maximum(jnp.dot(x, w1, preferred_element_type=jnp.float32) + b1, 0.0)
    l2 = jnp.maximum(jnp.dot(l1, w2, preferred_element_type=jnp.float32) + b2, 0.0)
    out = jnp.dot(l2, w3, preferred_element_type=jnp.float32) + b3
    out_ref[...] = out.astype(out_ref.dtype)


def pack_params(params, in_size, out_size):
    """Pack all 3 weights + 3 biases into one (rows, W) f32 buffer.

    Each weight block starts on an 8-row (sublane) boundary; biases occupy the
    last 8-row slab (one row each).  Returns (buffer, (r1, r2, r3)).
    """
    width = max(H1, H2, out_size)
    r1 = _round_up(in_size, 8)            # start of W2 rows
    r2 = r1 + _round_up(H1, 8)            # start of W3 rows
    r3 = r2 + _round_up(H2, 8)            # start of bias rows
    rows = r3 + 8

    buf = jnp.zeros((rows, width), jnp.float32)
    buf = buf.at[0:in_size, 0:H1].set(params["w1"])
    buf = buf.at[r1:r1 + H1, 0:H2].set(params["w2"])
    buf = buf.at[r2:r2 + H2, 0:out_size].set(params["w3"])
    buf = buf.at[r3, 0:H1].set(params["b1"].reshape(-1))
    buf = buf.at[r3 + 1, 0:H2].set(params["b2"].reshape(-1))
    buf = buf.at[r3 + 2, 0:out_size].set(params["b3"].reshape(-1))
    return buf, (r1, r2, r3)


def big_network(x, params, *, block_b=128):
    """x: (B, input_size) f32 -> (B, output_size) f32."""
    B, in_size = x.shape
    out_size = params["w3"].shape[1]

    packed, (r1, r2, r3) = pack_params(params, in_size, out_size)

    # Batch tile: multiple of 8 (sublane); cap at block_b; pad batch to fit.
    bb = block_b if B >= block_b else _round_up(B, 8)
    b_pad = _round_up(B, bb)
    if b_pad != B:
        x = jnp.pad(x, ((0, b_pad - B), (0, 0)))
    grid = (b_pad // bb,)

    kernel = functools.partial(
        big_network_kernel,
        in_size=in_size, out_size=out_size, r1=r1, r2=r2, r3=r3)

    out = pl.pallas_call(
        kernel,
        out_shape=jax.ShapeDtypeStruct((b_pad, out_size), jnp.float32),
        grid=grid,
        in_specs=[
            # x streams through, one batch tile per grid step.
            pl.BlockSpec((bb, in_size), lambda i: (i, 0)),
            # Packed params: same block every step -> stays VMEM-resident.
            pl.BlockSpec(packed.shape, lambda i: (0, 0)),
        ],
        out_specs=pl.BlockSpec((bb, out_size), lambda i: (i, 0)),
        compiler_params=pltpu.CompilerParams(
            dimension_semantics=("parallel",)),
    )(x, packed)

    return out[:B]


def init_params(key, input_size, output_size):
    """nn.Linear-style U(-1/sqrt(fan_in), 1/sqrt(fan_in)) init.
    Weights stored pre-transposed as (in_features, out_features)."""
    def linear(k, fan_in, fan_out):
        kw, kb = jax.random.split(k)
        bound = 1.0 / jnp.sqrt(fan_in)
        w = jax.random.uniform(kw, (fan_in, fan_out), jnp.float32, -bound, bound)
        b = jax.random.uniform(kb, (1, fan_out), jnp.float32, -bound, bound)
        return w, b

    keys = jax.random.split(key, 3)
    w1, b1 = linear(keys[0], input_size, H1)
    w2, b2 = linear(keys[1], H1, H2)
    w3, b3 = linear(keys[2], H2, output_size)
    return dict(w1=w1, b1=b1, w2=w2, b2=b2, w3=w3, b3=b3)


def reference_forward(x, p):
    l1 = jnp.maximum(x @ p["w1"] + p["b1"], 0.0)
    l2 = jnp.maximum(l1 @ p["w2"] + p["b2"], 0.0)
    return l2 @ p["w3"] + p["b3"]


if __name__ == "__main__":
    key = jax.random.PRNGKey(0)
    k_x, k_p = jax.random.split(key)

    batch = 8
    input_size = 16
    output_size = 4

    x = jax.random.normal(k_x, (batch, input_size), jnp.float32)
    params = init_params(k_p, input_size, output_size)

    out = jax.block_until_ready(big_network(x, params))
    ref = reference_forward(x, params)

    assert out.shape == (batch, output_size)
    assert jnp.allclose(out, ref, atol=1e-5, rtol=1e-5), "mismatch vs reference"

    print("KERNEL_OK")
</pallas_src>

<mosaic_0001>
module attributes {stable_mosaic.version = 11 : i64} {
  func.func @big_network_kernel(%arg0: i32, %arg1: memref<8x16xf32, #tpu.memory_space<vmem>>, %arg2: memref<64x32xf32, #tpu.memory_space<vmem>>, %arg3: memref<8x4xf32, #tpu.memory_space<vmem>>) attributes {dimension_semantics = [#tpu.dimension_semantics<parallel>], iteration_bounds = array<i64: 1>, scalar_prefetch = 0 : i64, scratch_operands = 0 : i64, tpu.core_type = #tpu.core_type<tc>, window_params = [{transform_indices = @transform_0, window_bounds = array<i64: 8, 16>}, {pipeline_mode = #tpu.pipeline_mode<synchronous>, transform_indices = @transform_1, window_bounds = array<i64: 64, 32>}, {transform_indices = @transform_2, window_bounds = array<i64: 8, 4>}]} {
    %c0 = arith.constant 0 : index
    %c0_0 = arith.constant 0 : index
    %0 = vector.load %arg1[%c0, %c0_0] : memref<8x16xf32, #tpu.memory_space<vmem>>, vector<8x16xf32>
    %c0_1 = arith.constant 0 : index
    %c0_2 = arith.constant 0 : index
    %1 = vector.load %arg2[%c0_1, %c0_2] : memref<64x32xf32, #tpu.memory_space<vmem>>, vector<16x32xf32>
    %c16 = arith.constant 16 : index
    %c0_3 = arith.constant 0 : index
    %2 = vector.load %arg2[%c16, %c0_3] : memref<64x32xf32, #tpu.memory_space<vmem>>, vector<32x8xf32>
    %c48 = arith.constant 48 : index
    %c0_4 = arith.constant 0 : index
    %3 = vector.load %arg2[%c48, %c0_4] : memref<64x32xf32, #tpu.memory_space<vmem>>, vector<8x4xf32>
    %c56 = arith.constant 56 : index
    %c0_5 = arith.constant 0 : index
    %4 = vector.load %arg2[%c56, %c0_5] : memref<64x32xf32, #tpu.memory_space<vmem>>, vector<1x32xf32>
    %c57 = arith.constant 57 : index
    %c0_6 = arith.constant 0 : index
    %5 = vector.load %arg2[%c57, %c0_6] : memref<64x32xf32, #tpu.memory_space<vmem>>, vector<1x8xf32>
    %c58 = arith.constant 58 : index
    %c0_7 = arith.constant 0 : index
    %6 = vector.load %arg2[%c58, %c0_7] : memref<64x32xf32, #tpu.memory_space<vmem>>, vector<1x4xf32>
    %cst = arith.constant dense<0.000000e+00> : vector<8x32xf32>
    %7 = tpu.matmul %0, %1, %cst {dimension_numbers = #tpu.dot_dimension_numbers<[1], [0], [0], [1], [0, 0, 1, 1], [], []>} : vector<8x16xf32>, vector<16x32xf32>, vector<8x32xf32> -> vector<8x32xf32>
    %8 = vector.broadcast %4 : vector<1x32xf32> to vector<8x32xf32>
    %9 = arith.addf %7, %8 : vector<8x32xf32>
    %cst_8 = arith.constant 0.000000e+00 : f32
    %10 = vector.broadcast %cst_8 : f32 to vector<8x32xf32>
    %11 = arith.maximumf %9, %10 : vector<8x32xf32>
    %cst_9 = arith.constant dense<0.000000e+00> : vector<8x8xf32>
    %12 = tpu.matmul %11, %2, %cst_9 {dimension_numbers = #tpu.dot_dimension_numbers<[1], [0], [0], [1], [0, 0, 1, 1], [], []>} : vector<8x32xf32>, vector<32x8xf32>, vector<8x8xf32> -> vector<8x8xf32>
    %13 = vector.broadcast %5 : vector<1x8xf32> to vector<8x8xf32>
    %14 = arith.addf %12, %13 : vector<8x8xf32>
    %cst_10 = arith.constant 0.000000e+00 : f32
    %15 = vector.broadcast %cst_10 : f32 to vector<8x8xf32>
    %16 = arith.maximumf %14, %15 : vector<8x8xf32>
    %cst_11 = arith.constant dense<0.000000e+00> : vector<8x4xf32>
    %17 = tpu.matmul %16, %3, %cst_11 {dimension_numbers = #tpu.dot_dimension_numbers<[1], [0], [0], [1], [0, 0, 1, 1], [], []>} : vector<8x8xf32>, vector<8x4xf32>, vector<8x4xf32> -> vector<8x4xf32>
    %18 = vector.broadcast %6 : vector<1x4xf32> to vector<8x4xf32>
    %19 = arith.addf %17, %18 : vector<8x4xf32>
    %c0_12 = arith.constant 0 : index
    %c0_13 = arith.constant 0 : index
    %20 = vector.load %arg3[%c0_12, %c0_13] : memref<8x4xf32, #tpu.memory_space<vmem>>, vector<8x4xf32>
    tpu.vector_store %arg3[%c0_12, %c0_13], %19 {strides = array<i32>} : memref<8x4xf32, #tpu.memory_space<vmem>>, vector<8x4xf32>,
    return
  }
  func.func @transform_0(%arg0: i32) -> (i32, i32) {
    %c0_i32 = arith.constant 0 : i32
    %c0_i32_0 = arith.constant 0 : i32
    return %arg0, %c0_i32 : i32, i32
  }
  func.func @transform_1(%arg0: i32) -> (i32, i32) {
    %c0_i32 = arith.constant 0 : i32
    %c0_i32_0 = arith.constant 0 : i32
    %c0_i32_1 = arith.constant 0 : i32
    return %c0_i32, %c0_i32_0 : i32, i32
  }
  func.func @transform_2(%arg0: i32) -> (i32, i32) {
    %c0_i32 = arith.constant 0 : i32
    %c0_i32_0 = arith.constant 0 : i32
    return %arg0, %c0_i32 : i32, i32
  }
}

</mosaic_0001>

<bundles_post_ra>
// kernel: tpu_custom_call.1
= control target key start
LH: loop header
LB: loop body
LE: loop exit
PB: predicated region body
PF: predicated region fallthrough
CT: control target
= control target key end

     0   :  { %v305_v0 = vmov 0.0   ;;  %vm306_vm0 = vmmov 0   ;;  %vm26_vm1 = vcmask 130048   ;;  %vm105_vm2 = vcmask 261120   ;;  %s358_s1 = inlined_call_operand.vmem [shape: f32[64,32], index: 1, kind: input, shape index: {}]   ;;  %s359_s0 = inlined_call_operand.vmem [shape: f32[8,16], index: 0, kind: input, shape index: {}]   ;;  %s360_s2 = inlined_call_operand.vmem [shape: f32[8,4], index: 2, kind: output, shape index: {}]  }
   0x1   :  { %280 = vmatprep.subr.mxu0 %v305_v0  ;;  %v13_v1 = vld [vmem:[%s358_s1 + $0x8] sm:$0xff]  ;;  %v12_v2 = vld [vmem:[%s358_s1] sm:$0xff]  ;;  %284 = vmatprep.mubr.msk.f32.mxu0 %vm306_vm0, %v305_v0  ;;  %v15_v6 = vld [vmem:[%s358_s1 + $0x18] sm:$0xff]  ;;  %vm184_vm3 = vcmask 64512   ;;  %vm258_vm4 = vcmask 31744  }
   0x2   :  { %281 = vmatpush3.msra.mxu0 %v13_v1  ;;  %v11_v3 = vld [vmem:[%s359_s0] sm:$0xff]  ;;  %287 = vmatprep.subr.mxu1 %v305_v0  ;;  %v17_v4 = vld [vmem:[%s358_s1 + $0x28] sm:$0xff]  ;;  %v14_v7 = vld [vmem:[%s358_s1 + $0x10] sm:$0xff] }
   0x3   :  { %282 = vmatprep.subr.mxu0 %v305_v0  ;;  %288 = vmatpush3.msra.mxu1 %v17_v4  ;;  %v16_v5 = vld [vmem:[%s358_s1 + $0x20] sm:$0xff]  ;;  %v264_v8 = vld [vmem:[%s358_s1 + $0x38] ss:$0 sm:$0xff]  ;;  %v18_v13 = vld [vmem:[%s358_s1 + $0x30] sm:$0xff] }
   0x4   :  { %283 = vmatpush3.msra.mxu0 %v12_v2  ;;  %289 = vmatprep.subr.mxu1 %v305_v0  ;;  %v266_v14 = vld [vmem:[%s358_s1 + $0x39] ss:$0 sm:$0xff]  ;;  %v268_v19 = vld [vmem:[%s358_s1 + $0x3a] ss:$0 sm:$0xff] }
   0x5   :  { %285 = vmatmul.mubr.msk.f32.vlgmr.msra.gmra.mxu0 %vm26_vm1, %v11_v3  ;;  %295 = vmatprep.mubr.msk.f32.mxu1 %vm306_vm0, %v305_v0 }
   0x6   :  { %298 = vmatprep.subr.mxu0 %v305_v0  ;;  %300 = vmatprep.mubr.msk.f32.mxu0 %vm306_vm0, %v305_v0 }
   0x7   :  { %290 = vmatpush3.msra.mxu1 %v16_v5  ;;  %299 = vmatpush3.msra.mxu0 %v18_v13 }
   0x8   :  { %291 = vmatprep.subr.mxu1 %v305_v0 }
   0x9   :  { %292 = vmatpush3.msra.mxu1 %v15_v6 }
   0xa   :  { %293 = vmatprep.subr.mxu1 %v305_v0 }
   0xb   :  { %294 = vmatpush3.msra.mxu1 %v14_v7 }
  0xc5   :  { %v96_v9 = vpop.f32.mrf.mxu0 }
  0xc6   :  { %v97_v10 = vadd.f32 %v264_v8, %v96_v9 }
  0xc7   :  { %v286_v11 = vpop.f32.mrf.mxu0 }
  0xc8   :  { %v100_v12 = vmax.f32 %v97_v10, 0.0 }
  0xca   :  { %296 = vmatmul.mubr.msk.f32.vlgmr.msra.gmra.mxu1 %vm105_vm2, %v100_v12 }
 0x18a   :  { %v175_v15 = vpop.f32.mrf.mxu1 }
 0x18b   :  { %v176_v16 = vadd.f32 %v266_v14, %v175_v15 }
 0x18c   :  { %v297_v17 = vpop.f32.mrf.mxu1 }
 0x18d   :  { %v179_v18 = vmax.f32 %v176_v16, 0.0 }
 0x18f   :  { %301 = vmatmul.mubr.msk.f32.vlgmr.msra.gmra.mxu0 %vm184_vm3, %v179_v18 }
 0x24f   :  { %v254_v20 = vpop.f32.mrf.mxu0 }
 0x250   :  { %v255_v21 = vadd.f32 %v268_v19, %v254_v20 }
 0x251   :  { %v302_v22 = vpop.f32.mrf.mxu0 }
 0x252   :  { %259 = vst.msk [vmem:[%s360_s2] sm:$0xff] %vm258_vm4, %v255_v21 }

</bundles_post_ra>
